<compile_context>
chip_gen: v6e
topology: v6e:2x2x1
jax: 0.10.0
libtpu: 0.0.40
codegen_flags: <defaults>
</compile_context>

<pallas_src>
import math

import jax
import jax.numpy as jnp
from jax.experimental import pallas as pl
from jax.experimental.pallas import tpu as pltpu


def _round_up(x, m):
    return ((x + m - 1) // m) * m


def _patch_embed_kernel(x_ref, w_ref, b_ref, o_ref):
    # x_ref: (TM, K)  w_ref: (K, N)  b_ref: (1, N)  o_ref: (TM, N)
    # MXU matmul with f32 accumulation; bias add + cast stay in f32 on the VPU.
    acc = jnp.dot(x_ref[...], w_ref[...], preferred_element_type=jnp.float32)
    o_ref[...] = (acc + b_ref[...]).astype(o_ref.dtype)


def patch_embedding(x, weight, bias, *, patch_size, num_patches, embed_dim,
                    block_rows=1024):
    """x: (batch, seq_len) f32.  weight: (embed_dim, patch_size) (PyTorch layout).
    bias: (embed_dim,).  Returns (batch, num_patches, embed_dim)."""
    batch, seq_len = x.shape
    full_len = patch_size * num_patches
    if seq_len < full_len:
        # matches torch.nn.functional.pad: zero-pad the sequence tail
        x = jnp.pad(x, ((0, 0), (0, full_len - seq_len)))

    M = batch * num_patches                      # total number of patches
    w_t = weight.T                               # (patch_size, embed_dim), tiny

    # ---- choose a lane-dense output layout --------------------------------
    # Pack consecutive patches so the kernel's output row width is a multiple
    # of 128 lanes (unmasked stores) without writing any padding bytes to HBM.
    pack = 1
    if embed_dim % 128 != 0:
        p = 128 // math.gcd(embed_dim, 128)
        if M % p == 0 and p * embed_dim <= 4096 and p * patch_size <= 4096:
            pack = p

    if pack > 1:
        k_dim = pack * patch_size
        n_dim = pack * embed_dim                 # multiple of 128
        x2d = x.reshape(M // pack, k_dim)        # contiguous -> metadata-only
        eye = jnp.eye(pack, dtype=w_t.dtype)
        # block-diagonal weight: each packed patch hits its own copy of w_t
        w_k = jnp.einsum('pq,ke->pkqe', eye, w_t).reshape(k_dim, n_dim)
        b_k = jnp.tile(bias, pack).reshape(1, n_dim)
        n_valid = n_dim
        m_rows = M // pack
    else:
        # fallback: pad N up to a lane multiple (sliced off afterwards)
        k_dim = patch_size
        n_dim = _round_up(embed_dim, 128)
        x2d = x.reshape(M, patch_size)
        w_k = w_t if n_dim == embed_dim else jnp.pad(
            w_t, ((0, 0), (0, n_dim - embed_dim)))
        b_2d = bias.reshape(1, embed_dim)
        b_k = b_2d if n_dim == embed_dim else jnp.pad(
            b_2d, ((0, 0), (0, n_dim - embed_dim)))
        n_valid = embed_dim
        m_rows = M

    # ---- row-tile size: big enough to pipeline, small enough for VMEM -----
    bytes_per_row = 4 * (k_dim + n_dim)              # f32 in + out per row
    vmem_budget = 8 * 1024 * 1024                    # double-buffered blocks << v7x VMEM
    max_rows = max(8, (vmem_budget // (2 * bytes_per_row)) // 8 * 8)
    if m_rows % 8 == 0:
        tm = min(block_rows, max_rows, m_rows)       # multiple of 8
    elif m_rows <= block_rows:
        tm = m_rows                                  # single full-extent block
    else:
        tm = min(block_rows, max_rows)               # ragged last block (masked)

    grid = (pl.cdiv(m_rows, tm),)

    out2d = pl.pallas_call(
        _patch_embed_kernel,
        out_shape=jax.ShapeDtypeStruct((m_rows, n_dim), x.dtype),
        grid=grid,
        in_specs=[
            pl.BlockSpec((tm, k_dim), lambda i: (i, 0)),      # row tiles (pipelined)
            pl.BlockSpec((k_dim, n_dim), lambda i: (0, 0)),   # weight resident
            pl.BlockSpec((1, n_dim), lambda i: (0, 0)),       # bias resident
        ],
        out_specs=pl.BlockSpec((tm, n_dim), lambda i: (i, 0)),
        compiler_params=pltpu.CompilerParams(
            dimension_semantics=("parallel",)),               # shard rows over v7x's 2 TCs
        cost_estimate=pl.CostEstimate(
            flops=2 * m_rows * k_dim * n_dim,
            transcendentals=0,
            bytes_accessed=4 * (m_rows * k_dim + k_dim * n_dim
                                + m_rows * n_dim)),
    )(x2d, w_k, b_k)

    if n_valid != n_dim:
        out2d = out2d[:, :n_valid]
    return out2d.reshape(batch, num_patches, embed_dim)


if __name__ == "__main__":
    # small shapes consistent with the module
    batch = 2
    sequence_length = 16
    patch_size = 8
    embed_dim = 32
    num_patches = sequence_length // patch_size  # 2

    key = jax.random.PRNGKey(0)
    kx, kw, kb = jax.random.split(key, 3)

    # deterministic "nn.Linear(patch_size, embed_dim)" params (PyTorch-style
    # uniform(-1/sqrt(in), 1/sqrt(in)) init, torch layout).
    bound = 1.0 / (patch_size ** 0.5)
    weight = jax.random.uniform(kw, (embed_dim, patch_size), jnp.float32,
                                minval=-bound, maxval=bound)
    bias = jax.random.uniform(kb, (embed_dim,), jnp.float32,
                              minval=-bound, maxval=bound)

    x = jax.random.normal(kx, (batch, sequence_length), jnp.float32)

    out = patch_embedding(x, weight, bias,
                          patch_size=patch_size,
                          num_patches=num_patches,
                          embed_dim=embed_dim)
    out = jax.block_until_ready(out)

    # reference check in plain JAX
    ref = x.reshape(batch, num_patches, patch_size) @ weight.T + bias
    assert out.shape == (batch, num_patches, embed_dim)
    assert jnp.allclose(out, ref, atol=1e-5, rtol=1e-5)

    print("KERNEL_OK")
</pallas_src>

<mosaic_0001>
module attributes {stable_mosaic.version = 11 : i64} {
  func.func @_patch_embed_kernel(%arg0: i32, %arg1: memref<1x32xf32, #tpu.memory_space<vmem>>, %arg2: memref<32x128xf32, #tpu.memory_space<vmem>>, %arg3: memref<1x128xf32, #tpu.memory_space<vmem>>, %arg4: memref<1x128xf32, #tpu.memory_space<vmem>>) attributes {dimension_semantics = [#tpu.dimension_semantics<parallel>], iteration_bounds = array<i64: 1>, scalar_prefetch = 0 : i64, scratch_operands = 0 : i64, tpu.core_type = #tpu.core_type<tc>, window_params = [{transform_indices = @transform_0, window_bounds = array<i64: 1, 32>}, {pipeline_mode = #tpu.pipeline_mode<synchronous>, transform_indices = @transform_1, window_bounds = array<i64: 32, 128>}, {pipeline_mode = #tpu.pipeline_mode<synchronous>, transform_indices = @transform_2, window_bounds = array<i64: 1, 128>}, {transform_indices = @transform_3, window_bounds = array<i64: 1, 128>}]} {
    %c0 = arith.constant 0 : index
    %c0_0 = arith.constant 0 : index
    %0 = vector.load %arg1[%c0, %c0_0] : memref<1x32xf32, #tpu.memory_space<vmem>>, vector<1x32xf32>
    %c0_1 = arith.constant 0 : index
    %c0_2 = arith.constant 0 : index
    %1 = vector.load %arg2[%c0_1, %c0_2] : memref<32x128xf32, #tpu.memory_space<vmem>>, vector<32x128xf32>
    %cst = arith.constant dense<0.000000e+00> : vector<1x128xf32>
    %2 = tpu.matmul %0, %1, %cst {dimension_numbers = #tpu.dot_dimension_numbers<[1], [0], [0], [1], [0, 0, 1, 1], [], []>} : vector<1x32xf32>, vector<32x128xf32>, vector<1x128xf32> -> vector<1x128xf32>
    %c0_3 = arith.constant 0 : index
    %c0_4 = arith.constant 0 : index
    %3 = vector.load %arg3[%c0_3, %c0_4] : memref<1x128xf32, #tpu.memory_space<vmem>>, vector<1x128xf32>
    %4 = arith.addf %2, %3 : vector<1x128xf32>
    %c0_5 = arith.constant 0 : index
    %c0_6 = arith.constant 0 : index
    %5 = vector.load %arg4[%c0_5, %c0_6] : memref<1x128xf32, #tpu.memory_space<vmem>>, vector<1x128xf32>
    tpu.vector_store %arg4[%c0_5, %c0_6], %4 {strides = array<i32>} : memref<1x128xf32, #tpu.memory_space<vmem>>, vector<1x128xf32>,
    return
  }
  func.func @transform_0(%arg0: i32) -> (i32, i32) {
    %c0_i32 = arith.constant 0 : i32
    %c0_i32_0 = arith.constant 0 : i32
    return %arg0, %c0_i32 : i32, i32
  }
  func.func @transform_1(%arg0: i32) -> (i32, i32) {
    %c0_i32 = arith.constant 0 : i32
    %c0_i32_0 = arith.constant 0 : i32
    %c0_i32_1 = arith.constant 0 : i32
    return %c0_i32, %c0_i32_0 : i32, i32
  }
  func.func @transform_2(%arg0: i32) -> (i32, i32) {
    %c0_i32 = arith.constant 0 : i32
    %c0_i32_0 = arith.constant 0 : i32
    %c0_i32_1 = arith.constant 0 : i32
    return %c0_i32, %c0_i32_0 : i32, i32
  }
  func.func @transform_3(%arg0: i32) -> (i32, i32) {
    %c0_i32 = arith.constant 0 : i32
    %c0_i32_0 = arith.constant 0 : i32
    return %arg0, %c0_i32 : i32, i32
  }
}

</mosaic_0001>

<bundles_post_ra>
// kernel: tpu_custom_call.1
= control target key start
LH: loop header
LB: loop body
LE: loop exit
PB: predicated region body
PF: predicated region fallthrough
CT: control target
= control target key end

     0   :  { %8 = vsyncpa [#allocation3], 0  ;;  %s267_s0 = inlined_call_operand.hbm [shape: f32[1,32], index: 0, kind: input, shape index: {}]   ;;  %s268_s1 = inlined_call_operand.hbm [shape: f32[32,128], index: 1, kind: input, shape index: {}]   ;;  %s269_s2 = inlined_call_operand.vmem [shape: f32[1,128], index: 2, kind: input, shape index: {}]   ;;  %s270_s3 = inlined_call_operand.hbm [shape: f32[1,128], index: 3, kind: output, shape index: {}]  }
   0x1   :  { %9 = vsyncpa [#allocation6], 0 }
   0x2   :  { %10 = vsyncpa [#allocation4], 0  ;;  %s228_s12 = smov [#allocation2]   ;;  %s229_s14 = smov [#allocation5]  }
   0x3   :  { %s17_s13 = sshll.u32 %s228_s12, 4  ;;  %s26_s15 = sshll.u32 %s229_s14, 4  ;;  %s18_s13 = int_to_ptr.vmem [resolvable:$true] %s17_s13  ;;  %s27_s15 = int_to_ptr.vmem [resolvable:$true] %s26_s15 }
   0x4   :  { %s170_s16 = scalar_lea.vmem %s18_s13, 16  ;;  %s174_s17 = scalar_lea.vmem %s18_s13, 32 }
   0x5   :  { %p171_p0 = scmp.ne.s32.totalorder %s18_s13, %s170_s16  ;;  %p175_p1 = scmp.lt.s32.totalorder %s18_s13, %s18_s13 }
   0x6   :  { %p176_p2 = scmp.lt.s32.totalorder %s174_s17, %s170_s16 }
   0x8   :  { %p177_p3 = por %p176_p2, %p175_p1 }
   0xa   :  { %p178_p4 = pnand %p177_p3, %p171_p0 }
   0xc   :  { %181 = shalt.err (!%p178_p4)
}
   0xd   :  { %20 = dma.hbm_to_vmem [thread:$0]  %s267_s0, 16, %s18_s13, [#allocation3]  }
   0xe   :  { %s190_s20 = scalar_lea.vmem %s27_s15, 512  ;;  %p195_p6 = scmp.lt.s32.totalorder %s27_s15, %s27_s15 }
   0xf   :  { %p191_p5 = scmp.ne.s32.totalorder %s27_s15, %s190_s20  ;;  %p196_p7 = scmp.lt.s32.totalorder %s190_s20, %s190_s20 }
  0x11   :  { %p197_p8 = por %p196_p7, %p195_p6 }
  0x13   :  { %p198_p9 = pnand %p197_p8, %p191_p5 }
  0x15   :  { %201 = shalt.err (!%p198_p9)
}
  0x16   :  { %s230_s21 = smov 128   ;;  %s231_s22 = smov 8  }
  0x17   :  { %32 = dma.hbm_to_vmem [thread:$0]  %s268_s1, 512, %s27_s15, [#allocation6], %s230_s21, %s230_s21, %s231_s22  }
  0x18   :  { %222 = dma.done.wait [#allocation3], 16  }
  0x19   :  { %223 = vsyncadd [#allocation3], 4294967280 }
  0x1a   :  { %224 = dma.done.wait [#allocation6], 512  }
  0x1b   :  { %225 = vsyncadd [#allocation6], 4294966784  ;;  %v232_v0 = vmov 0.0   ;;  %vm233_vm0 = vmmov 0   ;;  %v45_v1 = vld [vmem:[#allocation5 + $0x18] sm:$0xff]  ;;  %v44_v2 = vld [vmem:[#allocation5 + $0x10] sm:$0xff] }
  0x1c   :  { %144 = vmatprep.subr.mxu0 %v232_v0  ;;  %152 = vmatprep.mubr.msk.f32.mxu0 %vm233_vm0, %v232_v0  ;;  %v43_v3 = vld [vmem:[#allocation5 + $0x8] sm:$0xff]  ;;  %v42_v4 = vld [vmem:[#allocation5] sm:$0xff]  ;;  %v41_v5 = vld [vmem:[#allocation2] sm:$0x1]  ;;  %vm47_vm1 = vcmask 261120   ;;  %s234_s25 = smov [#allocation7]  }
  0x1d   :  { %145 = vmatpush3.msra.mxu0 %v45_v1  ;;  %v46_v6 = vld [vmem:[%s269_s2] sm:$0x1]  ;;  %s128_s26 = sshll.u32 %s234_s25, 4  ;;  %s129_s26 = int_to_ptr.vmem [resolvable:$true] %s128_s26 }
  0x1e   :  { %146 = vmatprep.subr.mxu0 %v232_v0  ;;  %s202_s27 = scalar_lea.vmem %s129_s26, 16  ;;  %s206_s28 = scalar_lea.vmem %s129_s26, 32 }
  0x1f   :  { %147 = vmatpush3.msra.mxu0 %v44_v2  ;;  %p203_p10 = scmp.ne.s32.totalorder %s129_s26, %s202_s27  ;;  %p207_p11 = scmp.lt.s32.totalorder %s129_s26, %s129_s26 }
  0x20   :  { %148 = vmatprep.subr.mxu0 %v232_v0  ;;  %p208_p12 = scmp.lt.s32.totalorder %s206_s28, %s202_s27 }
  0x21   :  { %149 = vmatpush3.msra.mxu0 %v43_v3 }
  0x22   :  { %150 = vmatprep.subr.mxu0 %v232_v0  ;;  %p209_p13 = por %p208_p12, %p207_p11 }
  0x23   :  { %151 = vmatpush3.msra.mxu0 %v42_v4 }
  0x24   :  { %153 = vmatmul.mubr.msk.f32.vlgmr.msra.gmra.mxu0 %vm47_vm1, %v41_v5  ;;  %p210_p0 = pnand %p209_p13, %p203_p10 }
  0xe4   :  { %v117_v7 = vpop.f32.mrf.mxu0 }
  0xe5   :  { %v118_v8 = vadd.f32 %v117_v7, %v46_v6 }
  0xe6   :  { %v154_v9 = vpop.f32.mrf.mxu0 }
  0xe7   :  { %121 = vst [vmem:[#allocation7] sm:$0x1] %v118_v8 }
  0xe8   :  { %213 = shalt.err (!%p210_p0)
}
  0xe9   :  { %131 = dma.vmem_to_hbm [thread:$0]  %s129_s26, 16, %s270_s3, [#allocation4]  }
  0xea   :  { %226 = dma.done.wait [#allocation4], 16  }
  0xeb   :  { %227 = vsyncadd [#allocation4], 4294967280 }
  0xec   :  { %135 = vsyncpa [#allocation3], 1 }
  0xed   :  { %136 = vsyncpa [#allocation6], 1 }
  0xee   :  { %137 = vsyncpa [#allocation4], 1 }

</bundles_post_ra>
